<compile_context>
chip_gen: v5e
topology: v5e:2x2
jax: 0.10.0
libtpu: 0.0.40
codegen_flags: <defaults>
</compile_context>

<pallas_src>
import functools

import jax
import jax.numpy as jnp
from jax import lax
from jax.experimental import pallas as pl
from jax.experimental.pallas import tpu as pltpu


def _round_up(x: int, m: int) -> int:
    return (x + m - 1) // m * m


def _ce_kernel(logits_ref, target_ref, loss_ref):
    """Per-sample cross entropy, computed lane-dense (samples on lanes).

    loss[i] = logsumexp(logits[i]) - logits[i, target[i]]
    """
    x = logits_ref[...].astype(jnp.float32)            # (TILE_N, C): native-dtype DMA, f32 cast on VPU
    xt = x.T                                            # (C, TILE_N): one XLU transpose -> lane-dense samples
    c, tn = xt.shape

    m = jnp.max(xt, axis=0, keepdims=True)              # (1, TILE_N) sublane reduction
    e = jnp.exp(xt - m)                                  # EUP, 128 useful lanes per vreg
    lse = m + jnp.log(jnp.sum(e, axis=0, keepdims=True))

    tgt = target_ref[...]                                # (1, TILE_N) int32, lane-dense
    cls = lax.broadcasted_iota(jnp.int32, (c, tn), 0)    # class id per sublane row
    # Fused where-select gather (no one-hot multiply, no -inf*0 NaN, no MXU needed).
    picked = jnp.sum(jnp.where(cls == tgt, xt, 0.0), axis=0, keepdims=True)

    loss_ref[...] = lse - picked                         # (1, TILE_N) lane-dense, unmasked store


def _pick_tile_n(n: int, c: int, dtype) -> int:
    """Largest tile that keeps the estimated VMEM footprint ~24 MiB (v7x-safe)."""
    itemsize = jnp.dtype(dtype).itemsize
    lane_c = _round_up(c, 128)      # logits minor dim lane-pads to 128 in VMEM
    sub_c = _round_up(c, 8)         # transposed (C, TILE_N) temps pad C to 8 sublanes
    per_row = (2 * lane_c * itemsize   # double-buffered logits block (native dtype)
               + lane_c * 4            # one live f32 cast copy of the tile (pre-transpose)
               + 4 * sub_c * 4         # ~4 live f32 (C, TILE_N) temporaries (xt, e, mask, select)
               + 4 * 8 * 4)            # targets + loss (1, TILE_N) blocks, sublane-padded, double-buffered
    budget = 24 * 1024 * 1024
    tile = (budget // per_row) // 128 * 128
    return int(max(128, min(32768, tile)))


def _per_sample_ce(logits, targets, tile_n):
    """Tiled / pipelined per-sample CE losses, shape (N,), float32."""
    n, c = logits.shape
    targets = targets.astype(jnp.int32).reshape(1, n)    # lane-dense targets row (free reshape)
    num_tiles = pl.cdiv(n, tile_n)                        # no wrapper pad; tail tile is clamped by the DMA

    loss = pl.pallas_call(
        _ce_kernel,
        out_shape=jax.ShapeDtypeStruct((1, n), jnp.float32),
        grid=(num_tiles,),
        in_specs=[
            pl.BlockSpec((tile_n, c), lambda i: (i, 0)),  # logits tile, native dtype
            pl.BlockSpec((1, tile_n), lambda i: (0, i)),  # lane-dense targets
        ],
        out_specs=pl.BlockSpec((1, tile_n), lambda i: (0, i)),  # lane-dense loss row
        compiler_params=pltpu.CompilerParams(
            dimension_semantics=("parallel",),            # independent tiles -> megacore / v7x 2-TC sharding
            vmem_limit_bytes=32 * 1024 * 1024,
        ),
    )(logits, targets)

    return loss.reshape(-1)


def _kth_largest_exact(loss, keep_num):
    """Exact value of sort(loss, descending)[keep_num] for non-negative f32 `loss`.

    Bisects over the order-preserving int32 bit patterns of non-negative floats:
    kth is the smallest t with count(loss > t) <= keep_num.  32 fused compare+sum
    passes over the (N,) vector replace the full O(N log N) top_k / sort.
    """
    def body(_, state):
        lo, hi = state
        mid = lo + (hi - lo) // 2
        t = lax.bitcast_convert_type(mid, jnp.float32)
        cnt = jnp.sum((loss > t).astype(jnp.int32))
        pred = cnt <= keep_num
        return jnp.where(pred, lo, mid + 1), jnp.where(pred, mid, hi)

    lo0 = jnp.int32(0)
    hi0 = jnp.int32(0x7F800000)   # +inf bits: count(loss > inf) == 0, so predicate holds
    lo, _ = lax.fori_loop(0, 32, body, (lo0, hi0))
    return lax.bitcast_convert_type(lo, jnp.float32)


@functools.partial(jax.jit, static_argnames=("threshold", "keep_num", "tile_n"))
def _ohem_impl(logits, targets, *, threshold, keep_num, tile_n):
    loss = _per_sample_ce(logits, targets, tile_n)        # (N,) f32, always >= 0

    kth = _kth_largest_exact(loss, keep_num)              # exact k-th order statistic, no full sort

    # Branch A: mean of losses strictly greater than `threshold`.
    gt_thr = loss > threshold
    sum_thr = jnp.sum(jnp.where(gt_thr, loss, 0.0))
    cnt_thr = jnp.sum(gt_thr.astype(jnp.float32))
    # When this branch is selected, cnt_thr >= keep_num + 1 >= 1; the guard only
    # keeps the unselected branch NaN-free.
    mean_thr = sum_thr / jnp.maximum(cnt_thr, 1.0)

    # Branch B: mean of the top `keep_num` losses, exact tie handling at kth.
    gt_kth = loss > kth
    sum_gt = jnp.sum(jnp.where(gt_kth, loss, 0.0))
    cnt_gt = jnp.sum(gt_kth.astype(jnp.float32))
    mean_topk = (sum_gt + (keep_num - cnt_gt) * kth) / keep_num

    return jnp.where(kth > threshold, mean_thr, mean_topk)


def ohem_cross_entropy_loss(logits, targets, threshold, keep_num, tile_n=None):
    """Equivalent of OHEM_CrossEntroy_Loss(threshold, keep_num)(logits, targets)."""
    n, c = logits.shape
    if keep_num + 1 > n:
        raise ValueError(f"keep_num + 1 ({keep_num + 1}) must be <= number of samples ({n}).")
    if tile_n is None:
        tile_n = _pick_tile_n(n, c, logits.dtype)
    tile_n = int(tile_n)
    if tile_n >= n or n <= 128:
        tile_n = n                                   # single full-extent block: always layout-legal
    else:
        tile_n = max(128, (tile_n // 128) * 128)     # multi-tile path: lane-dense multiple of 128
    return _ohem_impl(
        logits, targets,
        threshold=float(threshold), keep_num=int(keep_num), tile_n=tile_n,
    )


def _reference_ohem(logits, targets, threshold, keep_num):
    """Pure-JAX (eager) reference mirroring the PyTorch forward."""
    logp = jax.nn.log_softmax(logits.astype(jnp.float32), axis=-1)
    loss = -jnp.take_along_axis(logp, targets[:, None].astype(jnp.int32), axis=-1)[:, 0]
    loss_sorted = jnp.sort(loss)[::-1]
    kth = loss_sorted[keep_num]
    if float(kth) > threshold:
        kept = loss_sorted[loss_sorted > threshold]
    else:
        kept = loss_sorted[:keep_num]
    return jnp.mean(kept)


if __name__ == "__main__":
    key = jax.random.PRNGKey(0)
    k1, k2, k3, k4, k5, k6 = jax.random.split(key, 6)

    # Case 1: two full tiles, f32 logits, threshold branch typically taken.
    N1, C1, thr1, keep1 = 256, 16, 0.7, 32
    logits1 = jax.random.normal(k1, (N1, C1), dtype=jnp.float32)
    targets1 = jax.random.randint(k2, (N1,), 0, C1, dtype=jnp.int32)
    out1 = jax.block_until_ready(ohem_cross_entropy_loss(logits1, targets1, thr1, keep1, tile_n=128))
    ref1 = _reference_ohem(logits1, targets1, thr1, keep1)
    assert jnp.allclose(out1, ref1, atol=1e-5, rtol=1e-5), (out1, ref1)

    # Case 2: bf16 logits streamed natively, odd C=19, partial tail tile (no wrapper pad).
    N2, C2, thr2, keep2 = 300, 19, 0.7, 48
    logits2 = jax.random.normal(k3, (N2, C2), dtype=jnp.float32).astype(jnp.bfloat16)
    targets2 = jax.random.randint(k4, (N2,), 0, C2, dtype=jnp.int32)
    out2 = jax.block_until_ready(ohem_cross_entropy_loss(logits2, targets2, thr2, keep2, tile_n=128))
    ref2 = _reference_ohem(logits2, targets2, thr2, keep2)
    assert jnp.allclose(out2, ref2, atol=1e-4, rtol=1e-4), (out2, ref2)

    # Case 3: default tile heuristic (single full-extent block), high threshold -> top-k branch.
    N3, C3, thr3, keep3 = 200, 19, 5.0, 24
    logits3 = jax.random.normal(k5, (N3, C3), dtype=jnp.float32)
    targets3 = jax.random.randint(k6, (N3,), 0, C3, dtype=jnp.int32)
    out3 = jax.block_until_ready(ohem_cross_entropy_loss(logits3, targets3, thr3, keep3))
    ref3 = _reference_ohem(logits3, targets3, thr3, keep3)
    assert jnp.allclose(out3, ref3, atol=1e-5, rtol=1e-5), (out3, ref3)

    print("KERNEL_OK")
</pallas_src>

<mosaic_0001>
module attributes {stable_mosaic.version = 11 : i64} {
  func.func @_ce_kernel(%arg0: i32, %arg1: memref<128x16xf32, #tpu.memory_space<vmem>>, %arg2: memref<1x128xi32, #tpu.memory_space<vmem>>, %arg3: memref<1x128xf32, #tpu.memory_space<vmem>>) attributes {dimension_semantics = [#tpu.dimension_semantics<parallel>], iteration_bounds = array<i64: 2>, scalar_prefetch = 0 : i64, scratch_operands = 0 : i64, tpu.core_type = #tpu.core_type<tc>, window_params = [{transform_indices = @transform_0, window_bounds = array<i64: 128, 16>}, {transform_indices = @transform_1, window_bounds = array<i64: 1, 128>}, {transform_indices = @transform_2, window_bounds = array<i64: 1, 128>}]} {
    %c0 = arith.constant 0 : index
    %c0_0 = arith.constant 0 : index
    %0 = vector.load %arg1[%c0, %c0_0] : memref<128x16xf32, #tpu.memory_space<vmem>>, vector<128x16xf32>
    %1 = tpu.transpose %0, [1, 0] : vector<128x16xf32> -> vector<16x128xf32>
    %cst = arith.constant dense<0xFF800000> : vector<128xf32>
    %2 = vector.multi_reduction <maximumf>, %1, %cst [0] : vector<16x128xf32> to vector<128xf32>
    %3 = vector.shape_cast %2 : vector<128xf32> to vector<1x128xf32>
    %4 = vector.broadcast %3 : vector<1x128xf32> to vector<16x128xf32>
    %5 = arith.subf %1, %4 : vector<16x128xf32>
    %6 = math.exp %5 : vector<16x128xf32>
    %cst_1 = arith.constant dense<0.000000e+00> : vector<128xf32>
    %7 = vector.multi_reduction <add>, %6, %cst_1 [0] : vector<16x128xf32> to vector<128xf32>
    %8 = vector.shape_cast %7 : vector<128xf32> to vector<1x128xf32>
    %9 = math.log %8 : vector<1x128xf32>
    %10 = arith.addf %3, %9 : vector<1x128xf32>
    %c0_2 = arith.constant 0 : index
    %c0_3 = arith.constant 0 : index
    %11 = vector.load %arg2[%c0_2, %c0_3] : memref<1x128xi32, #tpu.memory_space<vmem>>, vector<1x128xi32>
    %12 = tpu.iota {dimensions = array<i32: 0>} : vector<16x128xi32>
    %13 = vector.broadcast %11 : vector<1x128xi32> to vector<16x128xi32>
    %14 = arith.cmpi eq, %12, %13 : vector<16x128xi32>
    %cst_4 = arith.constant 0.000000e+00 : f32
    %15 = vector.broadcast %cst_4 : f32 to vector<16x128xf32>
    %16 = arith.select %14, %1, %15 : vector<16x128xi1>, vector<16x128xf32>
    %cst_5 = arith.constant dense<0.000000e+00> : vector<128xf32>
    %17 = vector.multi_reduction <add>, %16, %cst_5 [0] : vector<16x128xf32> to vector<128xf32>
    %18 = vector.shape_cast %17 : vector<128xf32> to vector<1x128xf32>
    %19 = arith.subf %10, %18 : vector<1x128xf32>
    %c0_6 = arith.constant 0 : index
    %c0_7 = arith.constant 0 : index
    %20 = vector.load %arg3[%c0_6, %c0_7] : memref<1x128xf32, #tpu.memory_space<vmem>>, vector<1x128xf32>
    tpu.vector_store %arg3[%c0_6, %c0_7], %19 {strides = array<i32>} : memref<1x128xf32, #tpu.memory_space<vmem>>, vector<1x128xf32>,
    return
  }
  func.func @transform_0(%arg0: i32) -> (i32, i32) {
    %c0_i32 = arith.constant 0 : i32
    %c0_i32_0 = arith.constant 0 : i32
    return %arg0, %c0_i32 : i32, i32
  }
  func.func @transform_1(%arg0: i32) -> (i32, i32) {
    %c0_i32 = arith.constant 0 : i32
    %c0_i32_0 = arith.constant 0 : i32
    return %c0_i32, %arg0 : i32, i32
  }
  func.func @transform_2(%arg0: i32) -> (i32, i32) {
    %c0_i32 = arith.constant 0 : i32
    %c0_i32_0 = arith.constant 0 : i32
    return %c0_i32, %arg0 : i32, i32
  }
}

</mosaic_0001>

<bundles_post_ra>
// kernel: _ohem_impl.1
= control target key start
LH: loop header
LB: loop body
LE: loop exit
PB: predicated region body
PF: predicated region fallthrough
CT: control target
= control target key end

     0   :  { %s348_s9 = smov 0   ;;  %s395_s0 = inlined_call_operand.vmem [shape: f32[256,16], index: 0, kind: input, shape index: {}]   ;;  %s396_s1 = inlined_call_operand.vmem [shape: s32[1,256], index: 1, kind: input, shape index: {}]   ;;  %s397_s2 = inlined_call_operand.vmem [shape: f32[1,256], index: 2, kind: output, shape index: {}]  }
   0x1 LB: > { %s301_s10 = sadd.s32 4294967295, %s331_s9   ;;  %p305_p0 = scmp.ge.s32.totalorder %s331_s9, 1  ;;  %s331_s9 = sphi %s348_s9, %s12_s9  }
   0x2   : > { %p121_p1 = scmp.lt.s32.totalorder %s331_s9, 3 }
   0x4   : > { %p122_p2 = pnand %p305_p0, %p121_p1 }
   0x5   : > { %s306_s11 = sshll.u32 (!%p122_p2), %s301_s10, 4  ;;  %p150_p3 = scmp.lt.s32.totalorder (!%p122_p2), %s301_s10, 1 }
   0x6   : > { %125 = sbr.rel (%p122_p2) target bundleno = 242 (0xf2), region = 28  ;;  %p145_p4 = scmp.lt.s32.totalorder (!%p122_p2), %s306_s11, 31 }
   0xb   : > { %s399_s10 = smov (!%p150_p3, %s301_s10), 1  ;;  %s401_s11 = smov (!%p145_p4, %s306_s11), 31  ;;  %v228_v23 = vlaneseq }
   0xc   : > { %s152_s14 = scalar_lea.vmem %s396_s1, %s399_s10  ;;  %s307_s15 = sshll.u32 %s401_s11, 3 }
   0xd   : > { %s365_s18 = scalar_lea.vmem %s395_s0, %s307_s15  ;;  %v229_v26 = vshrl.u32 %v228_v23, 7  ;;  %v318_v32 = vld [vmem:[%s152_s14] ss:$0 sm:$0xff]  ;;  %s155_s23 = scalar_lea.vmem %s397_s2, %s399_s10 }
   0xe   : > { %v156_v0 = vld [vmem:[%s365_s18] sm:$0xff]  ;;  %v157_v1 = vld [vmem:[%s365_s18 + $0x8] sm:$0xff]  ;;  %v158_v2 = vld [vmem:[%s365_s18 + $0x10] sm:$0xff] }
   0xf   : > { %172 = vxpose.xlu0.b32.start [1/16] (narrow) %v156_v0, 16  ;;  %v159_v3 = vld [vmem:[%s365_s18 + $0x18] sm:$0xff]  ;;  %v160_v4 = vld [vmem:[%s365_s18 + $0x20] sm:$0xff]  ;;  %v161_v5 = vld [vmem:[%s365_s18 + $0x28] sm:$0xff]  ;;  %v230_v29 = vadd.s32 8, %v229_v26  ;;  %vm232_vm1 = vcmp.eq.s32.totalorder %v229_v26, %v318_v32 }
  0x10   : > { %v162_v6 = vld [vmem:[%s365_s18 + $0x30] sm:$0xff]  ;;  %v163_v7 = vld [vmem:[%s365_s18 + $0x38] sm:$0xff]  ;;  %v164_v8 = vld [vmem:[%s365_s18 + $0x40] sm:$0xff] }
  0x11   : > { %v165_v9 = vld [vmem:[%s365_s18 + $0x48] sm:$0xff]  ;;  %v166_v10 = vld [vmem:[%s365_s18 + $0x50] sm:$0xff]  ;;  %v167_v11 = vld [vmem:[%s365_s18 + $0x58] sm:$0xff]  ;;  %vm233_vm0 = vcmp.eq.s32.totalorder %v230_v29, %v318_v32 }
  0x12   : > { %v168_v12 = vld [vmem:[%s365_s18 + $0x60] sm:$0xff]  ;;  %v169_v13 = vld [vmem:[%s365_s18 + $0x68] sm:$0xff]  ;;  %v170_v14 = vld [vmem:[%s365_s18 + $0x70] sm:$0xff] }
  0x13   : > { %v171_v15 = vld [vmem:[%s365_s18 + $0x78] sm:$0xff] }
  0x17   : > { %173 = vxpose.xlu0.b32.cont [2/16] (narrow) %v157_v1, 16 }
  0x1f   : > { %174 = vxpose.xlu0.b32.cont [3/16] (narrow) %v158_v2, 16 }
  0x27   : > { %175 = vxpose.xlu0.b32.cont [4/16] (narrow) %v159_v3, 16 }
  0x2f   : > { %176 = vxpose.xlu0.b32.cont [5/16] (narrow) %v160_v4, 16 }
  0x37   : > { %177 = vxpose.xlu0.b32.cont [6/16] (narrow) %v161_v5, 16 }
  0x3f   : > { %178 = vxpose.xlu0.b32.cont [7/16] (narrow) %v162_v6, 16 }
  0x47   : > { %179 = vxpose.xlu0.b32.cont [8/16] (narrow) %v163_v7, 16 }
  0x4f   : > { %180 = vxpose.xlu0.b32.cont [9/16] (narrow) %v164_v8, 16 }
  0x57   : > { %181 = vxpose.xlu0.b32.cont [10/16] (narrow) %v165_v9, 16 }
  0x5f   : > { %182 = vxpose.xlu0.b32.cont [11/16] (narrow) %v166_v10, 16 }
  0x67   : > { %183 = vxpose.xlu0.b32.cont [12/16] (narrow) %v167_v11, 16 }
  0x6f   : > { %184 = vxpose.xlu0.b32.cont [13/16] (narrow) %v168_v12, 16 }
  0x77   : > { %185 = vxpose.xlu0.b32.cont [14/16] (narrow) %v169_v13, 16 }
  0x7f   : > { %186 = vxpose.xlu0.b32.cont [15/16] (narrow) %v170_v14, 16 }
  0x87   : > { %187 = vxpose.xlu0.b32.end [16/16] (narrow) %v171_v15, 16 }
  0xb3   : > { %v188_v16 = vpop.trf.xlu0 }
  0xb4   : > { %v234_v35 = vsel %vm232_vm1, %v188_v16, 0.0 }
  0xbb   : > { %v189_v17 = vpop.trf.xlu0 }
  0xbc   : > { %v204_v18 = vmax.f32 %v188_v16, %v189_v17  ;;  %v235_v33 = vsel %vm233_vm0, %v189_v17, 0.0 }
  0xbd   : > { %v236_v37 = vadd.f32 %v235_v33, %v234_v35 }
  0xbe   : > { %v205_v19 = vrot.slane %v204_v18, 4 }
  0xbf   : > { %v237_v40 = vrot.slane %v236_v37, 4 }
  0xc0   : > { %v206_v20 = vmax.f32 %v204_v18, %v205_v19 }
  0xc1   : > { %v238_v43 = vadd.f32 %v237_v40, %v236_v37 }
  0xc2   : > { %v207_v21 = vrot.slane %v206_v20, 2 }
  0xc3   : > { %v239_v46 = vrot.slane %v238_v43, 2 }
  0xc4   : > { %v208_v22 = vmax.f32 %v206_v20, %v207_v21 }
  0xc5   : > { %v240_v48 = vadd.f32 %v239_v46, %v238_v43 }
  0xc6   : > { %v209_v24 = vrot.slane %v208_v22, 1 }
  0xc7   : > { %v241_v49 = vrot.slane %v240_v48, 1 }
  0xc8   : > { %v210_v25 = vmax.f32 %v208_v22, %v209_v24 }
  0xc9   : > { %v242_v53 = vadd.f32 %v241_v49, %v240_v48 }
  0xca   : > { %v211_v27 = vsub.f32 %v188_v16, %v210_v25  ;;  %v212_v28 = vsub.f32 %v189_v17, %v210_v25 }
  0xcc   : > { %v213_v30 = vmul.f32 1.442695, %v211_v27  ;;  %v215_v31 = vmul.f32 1.442695, %v212_v28 }
  0xce   : > { %319 = vpow2.f32 %v213_v30 }
  0xcf   : > { %321 = vpow2.f32 %v215_v31 }
  0xd4   : > { %v320_v34 = vpop.eup %319 }
  0xd5   : > { %v322_v36 = vpop.eup %321 }
  0xd6   : > { %v217_v38 = vadd.f32 %v322_v36, %v320_v34 }
  0xd8   : > { %v218_v39 = vrot.slane %v217_v38, 4 }
  0xda   : > { %v219_v41 = vadd.f32 %v218_v39, %v217_v38 }
  0xdc   : > { %v220_v42 = vrot.slane %v219_v41, 2 }
  0xde   : > { %v221_v44 = vadd.f32 %v220_v42, %v219_v41 }
  0xe0   : > { %v222_v45 = vrot.slane %v221_v44, 1 }
  0xe2   : > { %v223_v47 = vadd.f32 %v222_v45, %v221_v44 }
  0xe4   : > { %323 = vlog2.f32 %v223_v47 }
  0xea   : > { %v324_v50 = vpop.eup %323 }
  0xeb   : > { %v225_v51 = vmul.f32 0.6931472, %v324_v50 }
  0xed   : > { %v226_v52 = vadd.f32 %v225_v51, %v210_v25 }
  0xef   : > { %v243_v54 = vsub.f32 %v226_v52, %v242_v53 }
  0xf1   : > { %244 = vst [vmem:[%s155_s23] sm:$0x1] %v243_v54 }
  0xf2 PF: > { %s12_s9 = sadd.s32 1, %s331_s9  }
  0xf3   : > { %p9_p5 = scmp.ge.s32.totalorder %s12_s9, 4  }
  0xf5   :  { %11 = sbr.rel (!%p9_p5) target bundleno = 1 (0x1), region = 61 }

</bundles_post_ra>
